<compile_context>
chip_gen: v6e
topology: v6e:2x2x1
jax: 0.10.0
libtpu: 0.0.40
codegen_flags: <defaults>
</compile_context>

<pallas_src>
import jax
import jax.numpy as jnp
from jax.experimental import pallas as pl
from jax.experimental.pallas import tpu as pltpu


def _prompt_cat_kernel(prompt_ref, x_ref, o_ref):
    # prompt_ref: (T, dt)        -- shared prompt tokens (same rows every step)
    # x_ref:      (bt, N, dt)    -- one batch chunk of x
    # o_ref:      (bt, T+N, dt)  -- concatenated output chunk
    t, dt = prompt_ref.shape
    bt = x_ref.shape[0]
    prompt_b = jnp.broadcast_to(prompt_ref[...][None, :, :], (bt, t, dt))
    # Small masked store for the T prompt rows, then one bulk store of x at a
    # (possibly) sublane-offset destination: interior tiles are rotate +
    # full-width stores, only the edge tiles are masked.
    o_ref[:, :t, :] = prompt_b
    o_ref[:, t:, :] = x_ref[...]


def _vmem_plan():
    """(physical VMEM, chooser budget, target output-slab bytes)."""
    try:
        info = pltpu.get_tpu_info()
        phys = int(getattr(info, "vmem_capacity_bytes", 0)) or (64 << 20)
    except Exception:
        phys = 64 << 20                      # conservative: v7x per-core VMEM
    budget = max((phys * 3) // 4 - (8 << 20), 24 << 20)
    budget = min(budget, 96 << 20)
    target = (8 << 20) if phys <= (64 << 20) else (16 << 20)
    return phys, budget, target


def _choose_tiles(B, N, T, D, itemsize, *, target_out_bytes, vmem_budget):
    """Pick (bt, dt): batch-chunk and embed-chunk sizes.

    Aims for ~target_out_bytes output slabs per grid step while keeping the
    double-buffered (x-in + out) blocks within vmem_budget.  The embed (lane)
    axis is only split when a single batch element would otherwise exceed the
    budget (e.g. B=1 with huge N*D); dt is always a 128-multiple dividing D so
    every store stays lane-dense and fully aligned.
    """
    if D % 128 == 0:
        dts = sorted(
            {k * 128 for k in range(1, D // 128 + 1) if D % (k * 128) == 0},
            reverse=True,
        )
    else:
        dts = [D]                            # can't split cleanly; keep full dim

    for dt in dts:
        per_b_in = N * dt * itemsize
        per_b_out = (T + N) * dt * itemsize
        per_b_2buf = 2 * (per_b_in + per_b_out)     # Pallas double-buffers in+out
        max_bt = vmem_budget // per_b_2buf
        if max_bt < 1:
            continue                                 # dt too big; split further
        want = max(1, target_out_bytes // per_b_out)
        bt = int(min(B, max_bt, want))
        # Keep >= 2 batch steps only if slabs stay >= ~2 MiB (pipelining
        # overlap; on v7x both TCs get work).  Otherwise one big step is fine.
        if bt == B and B >= 2:
            half = -(-B // 2)
            if half * per_b_out >= (2 << 20):
                bt = half
        # Mild preference for an even total step count (v7x: 2 TCs balanced).
        nb = -(-B // bt)
        nd = D // dt
        if nb > 1 and (nb * nd) % 2 == 1:
            bt_alt = -(-B // (nb + 1))
            if bt_alt >= 1 and bt_alt * per_b_out >= (2 << 20):
                bt = bt_alt
        return bt, dt
    return 1, dts[-1]


def prompt_token_forward(prompt_tokens, x):
    """prompt_tokens: (1, T, D); x: (B, N, D) -> (B, T+N, D)."""
    _, T, D = prompt_tokens.shape
    B, N, Dx = x.shape
    assert D == Dx, "embed_dim mismatch"

    prompt2d = prompt_tokens[0].astype(x.dtype)      # (T, D)
    itemsize = jnp.dtype(x.dtype).itemsize

    phys_vmem, budget, target = _vmem_plan()
    bt, dt = _choose_tiles(
        B, N, T, D, itemsize, target_out_bytes=target, vmem_budget=budget
    )
    nb = pl.cdiv(B, bt)          # ragged last batch block is fine (leading dim)
    nd = D // dt
    grid = (nb, nd)

    # Exact double-buffered block footprint + margin -> explicit VMEM limit so
    # the compiler actually accepts the large blocks we picked.
    footprint = 2 * (bt * N * dt + bt * (T + N) * dt + T * dt) * itemsize
    vmem_limit = int(
        min(max(footprint + (4 << 20), 16 << 20), phys_vmem - (4 << 20))
    )

    bytes_accessed = (B * N * D                      # read x
                      + B * (T + N) * D              # write concat output
                      + T * D) * itemsize            # read prompt tokens
    cost = pl.CostEstimate(flops=0, transcendentals=0,
                           bytes_accessed=bytes_accessed)

    grid_spec = pltpu.PrefetchScalarGridSpec(
        num_scalar_prefetch=0,
        grid=grid,
        in_specs=[
            # Prompt tokens: tiny (T, dt) block, identical for every batch step.
            pl.BlockSpec((T, dt), lambda b, d: (0, d)),
            # x: one (batch-chunk, embed-chunk) slab per grid step.
            pl.BlockSpec((bt, N, dt), lambda b, d: (b, 0, d)),
        ],
        out_specs=pl.BlockSpec((bt, T + N, dt), lambda b, d: (b, 0, d)),
    )
    return pl.pallas_call(
        _prompt_cat_kernel,
        out_shape=jax.ShapeDtypeStruct((B, T + N, D), x.dtype),
        grid_spec=grid_spec,
        compiler_params=pltpu.CompilerParams(
            dimension_semantics=("parallel", "parallel"),
            vmem_limit_bytes=vmem_limit,
        ),
        cost_estimate=cost,
    )(prompt2d, x)


def init_prompt_tokens(key, embed_dim, num_tokens=5, dtype=jnp.float32):
    # Matches nn.init.trunc_normal_(std=0.02): truncated normal in [-2, 2] std.
    pt = jax.random.truncated_normal(
        key, -2.0, 2.0, (1, num_tokens, embed_dim)) * 0.02
    return pt.astype(dtype)


if __name__ == "__main__":
    key = jax.random.PRNGKey(0)
    k_p, k_x = jax.random.split(key)

    # Small, layout-friendly shapes: D=128 keeps every store lane-dense (real
    # ViT dims 768/1024 are 128-multiples too).
    B, N, D = 4, 8, 128
    num_tokens = 5

    prompt_tokens = init_prompt_tokens(k_p, D, num_tokens)
    x = jax.random.normal(k_x, (B, N, D), dtype=jnp.float32)

    out = prompt_token_forward(prompt_tokens, x)
    out = jax.block_until_ready(out)

    # Reference check in plain JAX.
    ref = jnp.concatenate(
        [jnp.broadcast_to(prompt_tokens, (B, num_tokens, D)), x], axis=1
    )
    assert out.shape == (B, num_tokens + N, D)
    assert jnp.allclose(out, ref), "mismatch vs reference"

    print("KERNEL_OK")
</pallas_src>

<mosaic_0001>
module attributes {stable_mosaic.version = 11 : i64} {
  func.func @_prompt_cat_kernel(%arg0: i32, %arg1: i32, %arg2: memref<5x128xf32, #tpu.memory_space<vmem>>, %arg3: memref<4x8x128xf32, #tpu.memory_space<vmem>>, %arg4: memref<4x13x128xf32, #tpu.memory_space<vmem>>) attributes {dimension_semantics = [#tpu.dimension_semantics<parallel>, #tpu.dimension_semantics<parallel>], iteration_bounds = array<i64: 1, 1>, scalar_prefetch = 0 : i64, scratch_operands = 0 : i64, tpu.core_type = #tpu.core_type<tc>, window_params = [{transform_indices = @transform_0, window_bounds = array<i64: 5, 128>}, {transform_indices = @transform_1, window_bounds = array<i64: 4, 8, 128>}, {transform_indices = @transform_2, window_bounds = array<i64: 4, 13, 128>}]} {
    %c0 = arith.constant 0 : index
    %c0_0 = arith.constant 0 : index
    %0 = vector.load %arg2[%c0, %c0_0] : memref<5x128xf32, #tpu.memory_space<vmem>>, vector<5x128xf32>
    %1 = vector.shape_cast %0 : vector<5x128xf32> to vector<1x5x128xf32>
    %2 = vector.shape_cast %1 : vector<1x5x128xf32> to vector<1x5x128xf32>
    %3 = vector.broadcast %2 : vector<1x5x128xf32> to vector<4x5x128xf32>
    %c0_1 = arith.constant 0 : index
    %c0_2 = arith.constant 0 : index
    %c0_3 = arith.constant 0 : index
    %4 = vector.load %arg4[%c0_1, %c0_2, %c0_3] : memref<4x13x128xf32, #tpu.memory_space<vmem>>, vector<4x5x128xf32>
    tpu.vector_store %arg4[%c0_1, %c0_2, %c0_3], %3 {strides = array<i32>} : memref<4x13x128xf32, #tpu.memory_space<vmem>>, vector<4x5x128xf32>,
    %c0_4 = arith.constant 0 : index
    %c0_5 = arith.constant 0 : index
    %c0_6 = arith.constant 0 : index
    %5 = vector.load %arg3[%c0_4, %c0_5, %c0_6] : memref<4x8x128xf32, #tpu.memory_space<vmem>>, vector<4x8x128xf32>
    %c0_7 = arith.constant 0 : index
    %c5 = arith.constant 5 : index
    %c0_8 = arith.constant 0 : index
    %6 = vector.load %arg4[%c0_7, %c5, %c0_8] : memref<4x13x128xf32, #tpu.memory_space<vmem>>, vector<4x8x128xf32>
    tpu.vector_store %arg4[%c0_7, %c5, %c0_8], %5 {strides = array<i32>} : memref<4x13x128xf32, #tpu.memory_space<vmem>>, vector<4x8x128xf32>,
    return
  }
  func.func @transform_0(%arg0: i32, %arg1: i32) -> (i32, i32) {
    %c0_i32 = arith.constant 0 : i32
    %c0_i32_0 = arith.constant 0 : i32
    return %c0_i32, %arg1 : i32, i32
  }
  func.func @transform_1(%arg0: i32, %arg1: i32) -> (i32, i32, i32) {
    %c0_i32 = arith.constant 0 : i32
    %c0_i32_0 = arith.constant 0 : i32
    return %arg0, %c0_i32, %arg1 : i32, i32, i32
  }
  func.func @transform_2(%arg0: i32, %arg1: i32) -> (i32, i32, i32) {
    %c0_i32 = arith.constant 0 : i32
    %c0_i32_0 = arith.constant 0 : i32
    return %arg0, %c0_i32, %arg1 : i32, i32, i32
  }
}

</mosaic_0001>

<bundles_post_ra>
// kernel: tpu_custom_call.1
= control target key start
LH: loop header
LB: loop body
LE: loop exit
PB: predicated region body
PF: predicated region fallthrough
CT: control target
= control target key end

     0   :  { %7 = vsyncpa [#allocation3], 0  ;;  %s153_s0 = inlined_call_operand.hbm [shape: f32[5,128], index: 0, kind: input, shape index: {}]   ;;  %s154_s1 = inlined_call_operand.hbm [shape: f32[4,8,128], index: 1, kind: input, shape index: {}]   ;;  %s155_s2 = inlined_call_operand.vmem [shape: f32[4,13,128], index: 2, kind: output, shape index: {}]  }
   0x1   :  { %8 = vsyncpa [#allocation5], 0  ;;  %s104_s9 = smov [#allocation2]   ;;  %s105_s11 = smov [#allocation4]  }
   0x2   :  { %s15_s10 = sshll.u32 %s104_s9, 4  ;;  %s24_s12 = sshll.u32 %s105_s11, 4  ;;  %s16_s10 = int_to_ptr.vmem [resolvable:$true] %s15_s10  ;;  %s25_s12 = int_to_ptr.vmem [resolvable:$true] %s24_s12 }
   0x3   :  { %s68_s13 = scalar_lea.vmem %s16_s10, 128  ;;  %p73_p1 = scmp.lt.s32.totalorder %s16_s10, %s16_s10 }
   0x4   :  { %p69_p0 = scmp.ne.s32.totalorder %s16_s10, %s68_s13  ;;  %p74_p2 = scmp.lt.s32.totalorder %s68_s13, %s68_s13 }
   0x6   :  { %p75_p3 = por %p74_p2, %p73_p1 }
   0x8   :  { %p76_p4 = pnand %p75_p3, %p69_p0 }
   0xa   :  { %79 = shalt.err (!%p76_p4)
}
   0xb   :  { %18 = dma.hbm_to_vmem [thread:$0]  %s153_s0, 128, %s16_s10, [#allocation3]  }
   0xc   :  { %s88_s16 = scalar_lea.vmem %s25_s12, 512  ;;  %p93_p6 = scmp.lt.s32.totalorder %s25_s12, %s25_s12 }
   0xd   :  { %p89_p5 = scmp.ne.s32.totalorder %s25_s12, %s88_s16  ;;  %p94_p7 = scmp.lt.s32.totalorder %s88_s16, %s88_s16 }
   0xf   :  { %p95_p8 = por %p94_p7, %p93_p6 }
  0x11   :  { %p96_p9 = pnand %p95_p8, %p89_p5 }
  0x13   :  { %99 = shalt.err (!%p96_p9)
}
  0x14   :  { %s106_s17 = smov 128   ;;  %s107_s18 = smov 8  }
  0x15   :  { %30 = dma.hbm_to_vmem [thread:$0]  %s154_s1, 512, %s25_s12, [#allocation5], %s106_s17, %s106_s17, %s107_s18  }
  0x16   :  { %100 = dma.done.wait [#allocation3], 128  }
  0x17   :  { %101 = vsyncadd [#allocation3], 4294967168 }
  0x18   :  { %102 = dma.done.wait [#allocation5], 512  }
  0x19   :  { %103 = vsyncadd [#allocation5], 4294966784  ;;  %v37_v0 = vld [vmem:[#allocation2] sm:$0x1f]  ;;  %v42_v1 = vld [vmem:[#allocation4] sm:$0xff] }
  0x1a   :  { %v43_v2 = vld [vmem:[#allocation4 + $0x8] sm:$0xff]  ;;  %38 = vst [vmem:[%s155_s2] sm:$0x1f] %v37_v0  ;;  %39 = vst [vmem:[%s155_s2 + $0x10] sm:$0x1f] %v37_v0  ;;  %v44_v3 = vld [vmem:[#allocation4 + $0x10] sm:$0xff] }
  0x1b   :  { %40 = vst [vmem:[%s155_s2 + $0x20] sm:$0x1f] %v37_v0  ;;  %41 = vst [vmem:[%s155_s2 + $0x30] sm:$0x1f] %v37_v0  ;;  %v45_v4 = vld [vmem:[#allocation4 + $0x18] sm:$0xff] }
  0x1c   :  { %46 = vst [vmem:[%s155_s2 + $0x5] sm:$0xff] %v42_v1  ;;  %47 = vst [vmem:[%s155_s2 + $0x15] sm:$0xff] %v43_v2 }
  0x1d   :  { %48 = vst [vmem:[%s155_s2 + $0x25] sm:$0xff] %v44_v3  ;;  %49 = vst [vmem:[%s155_s2 + $0x35] sm:$0xff] %v45_v4 }
  0x1e   :  { %54 = vsyncpa [#allocation3], 1 }
  0x1f   :  { %55 = vsyncpa [#allocation5], 1 }

</bundles_post_ra>
